<compile_context>
chip_gen: v7x
topology: tpu7x:2x2x1
jax: 0.10.0
libtpu: 0.0.40
codegen_flags: <defaults>
</compile_context>

<pallas_src>
import functools
import math

import jax
import jax.numpy as jnp
from jax.experimental import pallas as pl
from jax.experimental.pallas import tpu as pltpu

MODEL_NUM = 181  # number of output classes


def _easynet_kernel(x_ref, vc_ref, o_ref):
    # x_ref: (TB, 1) input dtype, vc_ref: (2, MODEL_NUM) f32, o_ref: (TB, MODEL_NUM) f32
    x = x_ref[...].astype(jnp.float32)                        # in-kernel cast (free VPU slots)
    v = vc_ref[0:1, :]                                        # fused weight  (1, N)
    c = vc_ref[1:2, :]                                        # fused bias    (1, N)

    # fused affine map (VPU broadcast multiply-add; replaces both matmuls)
    logits = x * v + c                                        # (TB, N)

    # softmax over the last dim (PyTorch nn.Softmax() on a 2-D input -> dim=1)
    m = jnp.max(logits, axis=-1, keepdims=True)
    e = jnp.exp(logits - m)
    s = jnp.sum(e, axis=-1, keepdims=True)
    r = pl.reciprocal(s, approx=True)                         # EUP vrcp (own VLIW slot)
    r = r * (2.0 - s * r)                                     # one Newton step -> f32-accurate
    o_ref[...] = e * r


def fuse_params(w1, b1, w2):
    """Collapse Linear(1,2) -> Linear(2,181, no bias) into logits = x * vc[0] + vc[1].

    Done once at init (hoisted out of the forward path).
    w1: (2, 1), b1: (2,), w2: (181, 2)  ->  vc: (2, 181) f32  (row 0 = weight, row 1 = bias)
    """
    w1 = w1.astype(jnp.float32)
    b1 = b1.astype(jnp.float32)
    w2 = w2.astype(jnp.float32)
    v = (w2 @ w1).reshape(1, MODEL_NUM)
    c = (w2 @ b1).reshape(1, MODEL_NUM)
    return jnp.concatenate([v, c], axis=0)                    # (2, MODEL_NUM)


@functools.partial(jax.jit, static_argnames=("tb",))
def easynet_forward(x, vc, *, tb=1024):
    """x: (B, 1) float, vc: (2, 181) f32 from fuse_params(). Returns softmax probs (B, 181)."""
    B = x.shape[0]
    if B <= tb:
        tb = B                              # single grid step; full-array block (no 8-mult rule)
    else:
        tb = max(8, (tb // 8) * 8)          # (8,128) sublane rule for partial blocks
    grid = (pl.cdiv(B, tb),)                # B > tb  =>  >=2 steps => both v7x TCs get work

    cost = pl.CostEstimate(
        flops=6 * B * MODEL_NUM,                              # affine + softmax arithmetic
        transcendentals=B * (MODEL_NUM + 1),                  # exp per element + recip per row
        bytes_accessed=(B * 1 * x.dtype.itemsize              # x
                        + 2 * MODEL_NUM * 4                   # fused weights (resident)
                        + B * MODEL_NUM * 4),                 # output
    )

    return pl.pallas_call(
        _easynet_kernel,
        out_shape=jax.ShapeDtypeStruct((B, MODEL_NUM), jnp.float32),
        grid=grid,
        in_specs=[
            pl.BlockSpec((tb, 1), lambda i: (i, 0)),              # batch-tiled input
            pl.BlockSpec((2, MODEL_NUM), lambda i: (0, 0)),       # fused weight+bias (resident)
        ],
        out_specs=pl.BlockSpec((tb, MODEL_NUM), lambda i: (i, 0)),
        compiler_params=pltpu.CompilerParams(
            dimension_semantics=("parallel",)),                   # megacore split on v7x
        cost_estimate=cost,
    )(x, vc)


def init_params(key):
    """Deterministic init mimicking PyTorch nn.Linear defaults (kaiming-uniform)."""
    k1, k2, k3 = jax.random.split(key, 3)
    # filter: Linear(1, 2) -> weight (2, 1), bias (2,), fan_in = 1
    bound1 = 1.0 / math.sqrt(1.0)
    w1 = jax.random.uniform(k1, (2, 1), jnp.float32, -bound1, bound1)
    b1 = jax.random.uniform(k2, (2,), jnp.float32, -bound1, bound1)
    # bypass: Linear(2, 181, bias=False) -> weight (181, 2), fan_in = 2
    bound2 = 1.0 / math.sqrt(2.0)
    w2 = jax.random.uniform(k3, (MODEL_NUM, 2), jnp.float32, -bound2, bound2)
    return w1, b1, w2


if __name__ == "__main__":
    key = jax.random.PRNGKey(0)
    kp, kx = jax.random.split(key)
    w1, b1, w2 = init_params(kp)
    vc = fuse_params(w1, b1, w2)          # one-time weight fusion (not per forward call)

    # Case 1: small batch -> single-block grid (grid=(1,), block == full arrays)
    B = 16
    x = jax.random.normal(kx, (B, 1), jnp.float32)
    out = jax.block_until_ready(easynet_forward(x, vc))
    ref = jax.nn.softmax((x @ w1.T + b1) @ w2.T, axis=-1)
    assert out.shape == (B, MODEL_NUM)
    assert jnp.allclose(out, ref, atol=1e-5, rtol=1e-5)
    assert jnp.allclose(jnp.sum(out, axis=-1), 1.0, atol=1e-5)

    # Case 2: multi-step grid with a ragged last block (tb multiple of 8, B % tb != 0)
    B2 = 40
    x2 = jax.random.normal(jax.random.fold_in(kx, 1), (B2, 1), jnp.float32)
    out2 = jax.block_until_ready(easynet_forward(x2, vc, tb=16))
    ref2 = jax.nn.softmax((x2 @ w1.T + b1) @ w2.T, axis=-1)
    assert out2.shape == (B2, MODEL_NUM)
    assert jnp.allclose(out2, ref2, atol=1e-5, rtol=1e-5)
    assert jnp.allclose(jnp.sum(out2, axis=-1), 1.0, atol=1e-5)

    print("KERNEL_OK")
</pallas_src>

<mosaic_0001>
module attributes {stable_mosaic.version = 11 : i64} {
  func.func @_easynet_kernel(%arg0: i32, %arg1: memref<16x1xf32, #tpu.memory_space<vmem>>, %arg2: memref<2x181xf32, #tpu.memory_space<vmem>>, %arg3: memref<16x181xf32, #tpu.memory_space<vmem>>) attributes {dimension_semantics = [#tpu.dimension_semantics<parallel>], iteration_bounds = array<i64: 1>, scalar_prefetch = 0 : i64, scratch_operands = 0 : i64, tpu.core_type = #tpu.core_type<tc>, window_params = [{transform_indices = @transform_0, window_bounds = array<i64: 16, 1>}, {pipeline_mode = #tpu.pipeline_mode<synchronous>, transform_indices = @transform_1, window_bounds = array<i64: 2, 181>}, {transform_indices = @transform_2, window_bounds = array<i64: 16, 181>}]} {
    %c0 = arith.constant 0 : index
    %c0_0 = arith.constant 0 : index
    %0 = vector.load %arg1[%c0, %c0_0] : memref<16x1xf32, #tpu.memory_space<vmem>>, vector<16x1xf32>
    %c0_1 = arith.constant 0 : index
    %c0_2 = arith.constant 0 : index
    %1 = vector.load %arg2[%c0_1, %c0_2] : memref<2x181xf32, #tpu.memory_space<vmem>>, vector<1x181xf32>
    %c1 = arith.constant 1 : index
    %c0_3 = arith.constant 0 : index
    %2 = vector.load %arg2[%c1, %c0_3] : memref<2x181xf32, #tpu.memory_space<vmem>>, vector<1x181xf32>
    %3 = vector.broadcast %0 : vector<16x1xf32> to vector<16x181xf32>
    %4 = vector.broadcast %1 : vector<1x181xf32> to vector<16x181xf32>
    %5 = arith.mulf %3, %4 : vector<16x181xf32>
    %6 = vector.broadcast %2 : vector<1x181xf32> to vector<16x181xf32>
    %7 = arith.addf %5, %6 : vector<16x181xf32>
    %cst = arith.constant dense<0xFF800000> : vector<16xf32>
    %8 = vector.multi_reduction <maximumf>, %7, %cst [1] : vector<16x181xf32> to vector<16xf32>
    %9 = vector.shape_cast %8 : vector<16xf32> to vector<16x1xf32>
    %10 = vector.broadcast %9 : vector<16x1xf32> to vector<16x181xf32>
    %11 = arith.subf %7, %10 : vector<16x181xf32>
    %12 = math.exp %11 : vector<16x181xf32>
    %cst_4 = arith.constant dense<0.000000e+00> : vector<16xf32>
    %13 = vector.multi_reduction <add>, %12, %cst_4 [1] : vector<16x181xf32> to vector<16xf32>
    %14 = vector.shape_cast %13 : vector<16xf32> to vector<16x1xf32>
    %15 = tpu.reciprocal %14 {approx = true} : vector<16x1xf32> -> vector<16x1xf32>
    %16 = arith.mulf %14, %15 : vector<16x1xf32>
    %cst_5 = arith.constant 2.000000e+00 : f32
    %17 = vector.broadcast %cst_5 : f32 to vector<16x1xf32>
    %18 = arith.subf %17, %16 : vector<16x1xf32>
    %19 = arith.mulf %15, %18 : vector<16x1xf32>
    %20 = vector.broadcast %19 : vector<16x1xf32> to vector<16x181xf32>
    %21 = arith.mulf %12, %20 : vector<16x181xf32>
    %c0_6 = arith.constant 0 : index
    %c0_7 = arith.constant 0 : index
    %22 = vector.load %arg3[%c0_6, %c0_7] : memref<16x181xf32, #tpu.memory_space<vmem>>, vector<16x181xf32>
    tpu.vector_store %arg3[%c0_6, %c0_7], %21 {strides = array<i32>} : memref<16x181xf32, #tpu.memory_space<vmem>>, vector<16x181xf32>,
    return
  }
  func.func @transform_0(%arg0: i32) -> (i32, i32) {
    %c0_i32 = arith.constant 0 : i32
    %c0_i32_0 = arith.constant 0 : i32
    return %arg0, %c0_i32 : i32, i32
  }
  func.func @transform_1(%arg0: i32) -> (i32, i32) {
    %c0_i32 = arith.constant 0 : i32
    %c0_i32_0 = arith.constant 0 : i32
    %c0_i32_1 = arith.constant 0 : i32
    return %c0_i32, %c0_i32_0 : i32, i32
  }
  func.func @transform_2(%arg0: i32) -> (i32, i32) {
    %c0_i32 = arith.constant 0 : i32
    %c0_i32_0 = arith.constant 0 : i32
    return %arg0, %c0_i32 : i32, i32
  }
}

</mosaic_0001>

<bundles_post_ra>
// kernel: easynet_forward.1
= control target key start
LH: loop header
LB: loop body
LE: loop exit
PB: predicated region body
PF: predicated region fallthrough
CT: control target
= control target key end

     0   :  { %v160_v1 = vmov 0   ;;  %s209_s0 = inlined_call_operand.vmem [shape: f32[16,1], index: 0, kind: input, shape index: {}]   ;;  %s210_s1 = inlined_call_operand.vmem [shape: f32[2,181], index: 1, kind: input, shape index: {}]   ;;  %s211_s2 = inlined_call_operand.hbm [shape: f32[16,181], index: 2, kind: output, shape index: {}]  }
   0x1   :  { %v12_v0 = vld [vmem:[%s209_s0] sm:$0xff]  ;;  %123 = vset.pattern.permute.xlu0 %v160_v1 }
   0x2   :  { %7 = vsyncpa [#allocation3], 0  ;;  %19 = vperm.xlu0 %123, %v12_v0   ;;  %v13_v2 = vld [vmem:[%s209_s0 + $0x8] sm:$0xff]  ;;  %v28_v3 = vlaneseq  ;;  %v14_v7 = vld [vmem:[%s210_s1] ss:$2 sm:$0x3] }
   0x3   :  { %v118_v8 = vld [vmem:[%s210_s1 + $0x1] ss:$2 sm:$0x3]  ;;  %vm57_vm0 = vcmask 433152   ;;  %s161_s0 = smov [#allocation2]  }
   0x4   :  { %v29_v4 = vshrl.u32 %v28_v3, 7  ;;  %s107_s1 = sshll.u32 %s161_s0, 4  ;;  %s108_s1 = int_to_ptr.vmem [resolvable:$true] %s107_s1 }
   0x5   :  { %s136_s17 = scalar_lea.vmem %s108_s1, 512  ;;  %p141_p1 = scmp.lt.s32.totalorder %s108_s1, %s108_s1 }
   0x6   :  { %24 = vperm.xlu0 %123, %v13_v2   ;;  %v30_v5 = vsub.s32 0, %v29_v4  ;;  %v34_v6 = vsub.s32 1, %v29_v4  ;;  %p137_p0 = scmp.ne.s32.totalorder %s108_s1, %s136_s17  ;;  %p142_p2 = scmp.lt.s32.totalorder %s136_s17, %s136_s17 }
   0x8   :  { %v31_v9 = vrot.slane %v14_v7, %v30_v5  ;;  %v35_v10 = vrot.slane %v14_v7, %v34_v6  ;;  %v50_v11 = vrot.slane %v118_v8, %v34_v6  ;;  %v46_v12 = vrot.slane %v118_v8, %v30_v5  ;;  %p143_p3 = por %p142_p2, %p141_p1 }
   0xa   :  { %p144_p4 = pnand %p143_p3, %p137_p0 }
  0x81   :  { %v20_v13 = vpop.permute.xlu0 %19 }
  0x82   :  { %v38_v14 = vmul.f32 %v31_v9, %v20_v13  ;;  %v39_v15 = vmul.f32 %v35_v10, %v20_v13 }
  0x84   :  { %v53_v16 = vadd.f32 %v46_v12, %v38_v14  ;;  %v54_v17 = vadd.f32 %v50_v11, %v39_v15 }
  0x85   :  { %v25_v18 = vpop.permute.xlu0 %24 }
  0x86   :  { %v40_v19 = vmul.f32 %v31_v9, %v25_v18  ;;  %v41_v20 = vmul.f32 %v35_v10, %v25_v18  ;;  %v58_v21 = vsel %vm57_vm0, %v54_v17, -inf }
  0x87   :  { %v59_v22 = vmax.f32 %v53_v16, %v58_v21 }
  0x88   :  { %v56_v23 = vadd.f32 %v50_v11, %v41_v20  ;;  %v55_v24 = vadd.f32 %v46_v12, %v40_v19 }
  0x89   :  { %60 = vmax.xlane.f32.xlu1 %v59_v22 }
  0x8a   :  { %v62_v25 = vsel %vm57_vm0, %v56_v23, -inf }
  0x8b   :  { %v63_v26 = vmax.f32 %v55_v24, %v62_v25 }
  0x8d   :  { %64 = vmax.xlane.f32.xlu1 %v63_v26 }
 0x116   :  { %v61_v27 = vpop.xlane.xlu1 %60 }
 0x117   :  { %v66_v28 = vsub.f32 %v53_v16, %v61_v27  ;;  %v67_v29 = vsub.f32 %v54_v17, %v61_v27 }
 0x119   :  { %v70_v30 = vmul.f32 1.442695, %v66_v28  ;;  %v72_v31 = vmul.f32 1.442695, %v67_v29 }
 0x11a   :  { %v65_v32 = vpop.xlane.xlu1 %64 }
 0x11b   :  { %124 = vpow2.f32 %v70_v30  ;;  %v68_v33 = vsub.f32 %v55_v24, %v65_v32  ;;  %v69_v34 = vsub.f32 %v56_v23, %v65_v32 }
 0x11c   :  { %126 = vpow2.f32 %v72_v31 }
 0x11d   :  { %v74_v35 = vmul.f32 1.442695, %v68_v33  ;;  %v76_v36 = vmul.f32 1.442695, %v69_v34 }
 0x11f   :  { %128 = vpow2.f32 %v74_v35 }
 0x120   :  { %130 = vpow2.f32 %v76_v36 }
 0x125   :  { %v125_v37 = vpop.eup %124 }
 0x126   :  { %v127_v38 = vpop.eup %126 }
 0x127   :  { %v78_v39 = vsel %vm57_vm0, %v127_v38, 0.0 }
 0x128   :  { %v79_v40 = vadd.f32 %v125_v37, %v78_v39 }
 0x129   :  { %v129_v41 = vpop.eup %128 }
 0x12a   :  { %v131_v42 = vpop.eup %130  ;;  %80 = vadd.xlane.f32.xlu0 %v79_v40 }
 0x12b   :  { %v82_v43 = vsel %vm57_vm0, %v131_v42, 0.0 }
 0x12c   :  { %v83_v44 = vadd.f32 %v129_v41, %v82_v43 }
 0x12e   :  { %84 = vadd.xlane.f32.xlu1 %v83_v44 }
 0x1b7   :  { %v81_v45 = vpop.xlane.xlu0 %80 }
 0x1b8   :  { %132 = vrcp.f32 %v81_v45 }
 0x1bb   :  { %v85_v46 = vpop.xlane.xlu1 %84 }
 0x1bc   :  { %134 = vrcp.f32 %v85_v46 }
 0x1c2   :  { %v133_v47 = vpop.eup %132 }
 0x1c3   :  { %v88_v48 = vmul.f32 %v133_v47, %v81_v45 }
 0x1c5   :  { %v90_v49 = vsub.f32 2.0, %v88_v48 }
 0x1c6   :  { %v135_v50 = vpop.eup %134 }
 0x1c7   :  { %v92_v51 = vmul.f32 %v133_v47, %v90_v49  ;;  %v89_v52 = vmul.f32 %v135_v50, %v85_v46 }
 0x1c9   :  { %v94_v53 = vmul.f32 %v125_v37, %v92_v51  ;;  %v95_v54 = vmul.f32 %v127_v38, %v92_v51  ;;  %v91_v55 = vsub.f32 2.0, %v89_v52 }
 0x1cb   :  { %98 = vst [vmem:[#allocation2] sm:$0xff] %v94_v53  ;;  %99 = vst.msk [vmem:[#allocation2 + $0x8] sm:$0xff] %vm57_vm0, %v95_v54  ;;  %v93_v56 = vmul.f32 %v135_v50, %v91_v55 }
 0x1cd   :  { %v96_v57 = vmul.f32 %v129_v41, %v93_v56  ;;  %v97_v58 = vmul.f32 %v131_v42, %v93_v56 }
 0x1cf   :  { %100 = vst [vmem:[#allocation2 + $0x10] sm:$0xff] %v96_v57  ;;  %101 = vst.msk [vmem:[#allocation2 + $0x18] sm:$0xff] %vm57_vm0, %v97_v58 }
 0x1d0   :  { %147 = shalt.err (!%p144_p4)
}
 0x1d1   :  { %s148_s20 = scalar_lea.hbm %s211_s2, 512 }
 0x1d2   :  { %p149_p5 = scmp.ne.s32.totalorder %s211_s2, %s148_s20  ;;  %p152_p6 = scmp.lt.u32.totalorder %s148_s20, %s211_s2 }
 0x1d4   :  { %p154_p7 = pnand %p152_p6, %p149_p5 }
 0x1d6   :  { %157 = shalt.err (!%p154_p7)
}
 0x1d7   :  { %s162_s25 = smov 256   ;;  %s163_s26 = smov 16  }
 0x1d8   :  { %113 = dma.vmem_to_hbm [thread:$0]  %s108_s1, 512, %s211_s2, [#allocation3], %s162_s25, %s162_s25, %s163_s26  }
 0x1d9   :  { %158 = dma.done.wait [#allocation3], 512  }
 0x1da   :  { %159 = vsyncadd [#allocation3], 4294966784 }
 0x1db   :  { %117 = vsyncpa [#allocation3], 1 }

</bundles_post_ra>
